<compile_context>
chip_gen: v7x
topology: tpu7x:2x2x1
jax: 0.10.0
libtpu: 0.0.40
codegen_flags: <defaults>
</compile_context>

<pallas_src>
import jax
import jax.numpy as jnp
from jax.experimental import pallas as pl
from jax.experimental.pallas import tpu as pltpu


_MIN_CHUNK_BYTES = 1 << 20   # only split the DMA when chunks stay >= ~1 MiB
_MAX_CHUNKS = 8              # a handful of DMAs in flight is plenty


def _choose_chunks(n_elems, itemsize):
    """Largest power-of-two chunk count (<= _MAX_CHUNKS) that divides the
    element count evenly and keeps every chunk >= _MIN_CHUNK_BYTES.
    Falls back to 1 (single whole-array DMA) for any awkward size."""
    total_bytes = n_elems * itemsize
    c = _MAX_CHUNKS
    while c > 1:
        if n_elems % c == 0 and total_bytes // c >= _MIN_CHUNK_BYTES:
            return c
        c //= 2
    return 1


def _make_hbm_copy_kernel(n_chunks):
    def kernel(x_hbm, o_hbm, sems):
        # Direct HBM->HBM DMA copy: issue all chunk DMAs, then wait for all.
        copies = [
            pltpu.make_async_copy(x_hbm.at[c], o_hbm.at[c], sems.at[c])
            for c in range(n_chunks)
        ]
        for cp in copies:
            cp.start()
        for cp in copies:
            cp.wait()
    return kernel


@jax.jit
def base_video_model_forward(x):
    """Pallas implementation of BaseVideoModel.forward (identity pass-through).

    x: [B, C, H, W] (NCHW, matching the PyTorch layout).  Returns a tensor
    identical to x (same shape / dtype), produced into a fresh output buffer
    by a raw HBM->HBM DMA (no VMEM bounce, no vector-unit involvement).
    """
    orig_shape = x.shape
    n = x.size
    itemsize = jnp.dtype(x.dtype).itemsize
    n_chunks = _choose_chunks(n, itemsize)

    # Free layout view of the contiguous tensor: leading axis = DMA chunks.
    x2 = x.reshape(n_chunks, n // n_chunks)

    y2 = pl.pallas_call(
        _make_hbm_copy_kernel(n_chunks),
        out_shape=jax.ShapeDtypeStruct(x2.shape, x.dtype),
        in_specs=[pl.BlockSpec(memory_space=pl.ANY)],
        out_specs=pl.BlockSpec(memory_space=pl.ANY),
        scratch_shapes=[pltpu.SemaphoreType.DMA((n_chunks,))],
        cost_estimate=pl.CostEstimate(
            flops=0, transcendentals=0, bytes_accessed=2 * n * itemsize),
        compiler_params=pltpu.CompilerParams(has_side_effects=True),
    )(x2)
    return y2.reshape(orig_shape)


if __name__ == "__main__":
    key = jax.random.PRNGKey(0)

    # Small video-frame-like input consistent with an NCHW video model.
    x = jax.random.normal(key, (2, 4, 16, 16), dtype=jnp.float32)
    y = jax.block_until_ready(base_video_model_forward(x))
    assert y.shape == x.shape and y.dtype == x.dtype
    assert bool(jnp.array_equal(y, x))

    # Robustness: awkward shape with no clean power-of-two factorization
    # (previously hit the fragile whole-array-in-VMEM fallback).
    x2 = jax.random.normal(jax.random.PRNGKey(1), (3, 3, 7, 5), dtype=jnp.float32)
    y2 = jax.block_until_ready(base_video_model_forward(x2))
    assert y2.shape == x2.shape and y2.dtype == x2.dtype
    assert bool(jnp.array_equal(y2, x2))

    print("KERNEL_OK")
</pallas_src>

<mosaic_0001>
module attributes {stable_mosaic.version = 11 : i64} {
  func.func @kernel(%arg0: memref<1x2048xf32, #tpu.memory_space<any>>, %arg1: memref<1x2048xf32, #tpu.memory_space<any>>, %arg2: memref<1x!tpu.dma_semaphore, #tpu.memory_space<semaphore_mem>>) attributes {dimension_semantics = [], scalar_prefetch = 0 : i64, scratch_operands = 1 : i64, tpu.core_type = #tpu.core_type<tc>} {
    %c0_i32 = arith.constant 0 : i32
    %c0_i32_0 = arith.constant 0 : i32
    %c0_i32_1 = arith.constant 0 : i32
    %c0_i32_2 = arith.constant 0 : i32
    %0 = tpu.memref_slice %arg0[%c0_i32, %c0_i32_2] : memref<1x2048xf32, #tpu.memory_space<any>> -> memref<1x2048xf32, #tpu.memory_space<any>>
    %1 = tpu.memref_squeeze %0 : memref<1x2048xf32, #tpu.memory_space<any>> -> memref<2048xf32, #tpu.memory_space<any>>
    %c0_i32_3 = arith.constant 0 : i32
    %2 = tpu.memref_slice %arg1[%c0_i32_0, %c0_i32_3] : memref<1x2048xf32, #tpu.memory_space<any>> -> memref<1x2048xf32, #tpu.memory_space<any>>
    %3 = tpu.memref_squeeze %2 : memref<1x2048xf32, #tpu.memory_space<any>> -> memref<2048xf32, #tpu.memory_space<any>>
    %4 = tpu.memref_slice %arg2[%c0_i32_1] : memref<1x!tpu.dma_semaphore, #tpu.memory_space<semaphore_mem>> -> memref<1x!tpu.dma_semaphore, #tpu.memory_space<semaphore_mem>>
    %5 = tpu.memref_squeeze %4 : memref<1x!tpu.dma_semaphore, #tpu.memory_space<semaphore_mem>> -> memref<!tpu.dma_semaphore, #tpu.memory_space<semaphore_mem>>
    tpu.enqueue_dma source(%1 : memref<2048xf32, #tpu.memory_space<any>>) target(%3 : memref<2048xf32, #tpu.memory_space<any>>) target_semaphore(%5 : memref<!tpu.dma_semaphore, #tpu.memory_space<semaphore_mem>>)
    %c0_i32_4 = arith.constant 0 : i32
    %c0_i32_5 = arith.constant 0 : i32
    %c0_i32_6 = arith.constant 0 : i32
    %c0_i32_7 = arith.constant 0 : i32
    %6 = tpu.memref_slice %arg0[%c0_i32_4, %c0_i32_7] : memref<1x2048xf32, #tpu.memory_space<any>> -> memref<1x2048xf32, #tpu.memory_space<any>>
    %7 = tpu.memref_squeeze %6 : memref<1x2048xf32, #tpu.memory_space<any>> -> memref<2048xf32, #tpu.memory_space<any>>
    %c0_i32_8 = arith.constant 0 : i32
    %8 = tpu.memref_slice %arg1[%c0_i32_5, %c0_i32_8] : memref<1x2048xf32, #tpu.memory_space<any>> -> memref<1x2048xf32, #tpu.memory_space<any>>
    %9 = tpu.memref_squeeze %8 : memref<1x2048xf32, #tpu.memory_space<any>> -> memref<2048xf32, #tpu.memory_space<any>>
    %10 = tpu.memref_slice %arg2[%c0_i32_6] : memref<1x!tpu.dma_semaphore, #tpu.memory_space<semaphore_mem>> -> memref<1x!tpu.dma_semaphore, #tpu.memory_space<semaphore_mem>>
    %11 = tpu.memref_squeeze %10 : memref<1x!tpu.dma_semaphore, #tpu.memory_space<semaphore_mem>> -> memref<!tpu.dma_semaphore, #tpu.memory_space<semaphore_mem>>
    tpu.wait_dma2 semaphore(%11 : memref<!tpu.dma_semaphore, #tpu.memory_space<semaphore_mem>>) src(%7 : memref<2048xf32, #tpu.memory_space<any>>) dst(%9 : memref<2048xf32, #tpu.memory_space<any>>)
    return
  }
}

</mosaic_0001>

<bundles_post_ra>
// kernel: base_video_model_forward.1
= control target key start
LH: loop header
LB: loop body
LE: loop exit
PB: predicated region body
PF: predicated region fallthrough
CT: control target
= control target key end

     0   :  { %s91_s0 = inlined_call_operand.vmem [shape: f32[1,2048], index: 0, kind: input, shape index: {}]   ;;  %s92_s1 = inlined_call_operand.vmem [shape: f32[1,2048], index: 1, kind: output, shape index: {}]  }
   0x1   :  { %v38_v0 = vld [vmem:[%s91_s0] sm:$0xff]  ;;  %v40_v1 = vld [vmem:[%s91_s0 + $0x8] sm:$0xff] }
   0x2   :  { %39 = vst [vmem:[%s92_s1] sm:$0xff] %v38_v0  ;;  %41 = vst [vmem:[%s92_s1 + $0x8] sm:$0xff] %v40_v1 }
   0x3   :  { %49 = vsyncadd [#allocation2], 256 }
   0x4   :  { %67 = dma.done.wait [#allocation2], 256 }
   0x5   :  { %68 = vsyncadd [#allocation2], 4294967040 }
   0x6   :  { %52 = vsyncmov [#allocation2] }
   0x9   :  { %s53_s14 = vpop.sfrf %52 }
   0xa   :  { %p66_p0 = scmp.ne.s32.totalorder %s53_s14, 0 }
   0xc   :  { %57 = shalt.err (%p66_p0)  }

</bundles_post_ra>
